<compile_context>
chip_gen: v5e
topology: v5e:2x2
jax: 0.10.0
libtpu: 0.0.40
codegen_flags: <defaults>
</compile_context>

<pallas_src>
import numpy as np

import jax
import jax.numpy as jnp
from jax.experimental import pallas as pl
from jax.experimental.pallas import tpu as pltpu


def _round_up(x, m):
    return (x + m - 1) // m * m


def _yolo_conv_decode_kernel(x_ref, wt_ref, bias_ref, sig_ref, wh_ref,
                             mul_ref, addx_ref, addy_ref, xs_ref, ys_ref,
                             out_ref):
    """Fused 1x1-conv + YOLO decode (channel-major, pixels on lanes).

    Per grid step (b, t):
      x_ref    : (1, C, TM)     feature tile, compute dtype (bf16/f32)
      wt_ref   : (OUTP, C)      1x1 conv weight (zero-padded rows)
      bias_ref : (OUTP, 1)      conv bias (f32)
      sig/wh   : (OUTP, 1)      row masks: sigmoid rows / exp-anchor rows
      mul      : (OUTP, 1)      stride or stride*anchor multiplier per row
      addx/addy: (OUTP, 1)      stride on the x-row / y-row, else 0
      xs/ys    : (1, TM)        grid i / j index per pixel
      out_ref  : (1, OUTP, TM)  decoded prediction tile (f32)
    """
    x = x_ref[0]                                   # (C, TM)
    w = wt_ref[...]                                # (OUTP, C)
    conv = jnp.dot(w, x, preferred_element_type=jnp.float32) + bias_ref[...]

    # Broadcast the f32 row masks across lanes, then compare (robust lowering).
    sig = jnp.broadcast_to(sig_ref[...], conv.shape) > 0.0
    wh = jnp.broadcast_to(wh_ref[...], conv.shape) > 0.0

    s = jnp.where(sig, jax.nn.sigmoid(conv), conv)   # x,y,obj,cls -> sigmoid
    val = jnp.where(wh, jnp.exp(s), s)               # w,h -> exp (single EUP exp)

    xs = jnp.broadcast_to(xs_ref[...], conv.shape)
    ys = jnp.broadcast_to(ys_ref[...], conv.shape)

    # stride / stride*anchor and the grid offsets are folded into the per-row
    # constants, so the whole decode is one mul + two fma-style terms.
    pred = mul_ref[...] * val + addx_ref[...] * xs + addy_ref[...] * ys
    out_ref[0] = pred.astype(out_ref.dtype)


class YOLOLayerPallas:
    """Inference-path (labels=None) YOLOLayer with a Pallas TPU kernel."""

    def __init__(self, config_model, layer_no, in_ch, ignore_thre=0.7,
                 key=None, compute_dtype=jnp.bfloat16):
        strides = [32, 16, 8]
        self.anchors = config_model["ANCHORS"]
        self.anch_mask = config_model["ANCH_MASK"][layer_no]
        self.n_anchors = len(self.anch_mask)
        self.n_classes = config_model["N_CLASSES"]
        self.ignore_thre = ignore_thre
        self.stride = strides[layer_no]
        self.all_anchors_grid = [(w / self.stride, h / self.stride)
                                 for w, h in self.anchors]
        self.masked_anchors = np.array(
            [self.all_anchors_grid[i] for i in self.anch_mask], dtype=np.float32)
        self.in_ch = in_ch
        self.out_ch = self.n_anchors * (self.n_classes + 5)
        self.n_ch = 5 + self.n_classes
        self.compute_dtype = compute_dtype

        # Deterministic "conv" parameters (1x1 conv == dense over channels).
        key = jax.random.PRNGKey(0) if key is None else key
        kw, kb = jax.random.split(key)
        scale = 1.0 / np.sqrt(in_ch)
        self.weight = jax.random.uniform(kw, (self.out_ch, in_ch),
                                         jnp.float32, -scale, scale)
        self.bias = jax.random.uniform(kb, (self.out_ch,),
                                       jnp.float32, -scale, scale)

        # --- precomputed per-output-row decode constants -------------------
        OUT = self.out_ch
        OUTP = _round_up(OUT, 8)               # sublane-aligned output rows
        self.out_ch_pad = OUTP
        n_ch, A = self.n_ch, self.n_anchors
        stride_f = float(self.stride)

        o = np.arange(OUTP)
        c = o % n_ch                            # channel within one anchor
        a = np.minimum(o // n_ch, A - 1)        # anchor index (clamped for pad)
        valid = o < OUT

        sig = (((c < 2) | (c >= 4)) & valid).astype(np.float32)
        wh = (((c == 2) | (c == 3)) & valid).astype(np.float32)
        mul = np.where(c < 2, stride_f,
              np.where(c == 2, stride_f * self.masked_anchors[a, 0],
              np.where(c == 3, stride_f * self.masked_anchors[a, 1], 1.0)))
        mul = np.where(valid, mul, 0.0).astype(np.float32)
        addx = np.where((c == 0) & valid, stride_f, 0.0).astype(np.float32)
        addy = np.where((c == 1) & valid, stride_f, 0.0).astype(np.float32)

        def col(v):
            return jnp.asarray(np.asarray(v, np.float32).reshape(OUTP, 1))

        self._sig_row = col(sig)
        self._wh_row = col(wh)
        self._mul_row = col(mul)
        self._addx_row = col(addx)
        self._addy_row = col(addy)

        wt_pad = np.zeros((OUTP, in_ch), np.float32)
        wt_pad[:OUT] = np.asarray(self.weight)
        self._wt = jnp.asarray(wt_pad).astype(compute_dtype)

        b_pad = np.zeros((OUTP, 1), np.float32)
        b_pad[:OUT, 0] = np.asarray(self.bias)
        self._bias = jnp.asarray(b_pad)

    def __call__(self, xin):
        # xin: (B, C, H, W) float32, NCHW like PyTorch.
        B, C, H, W = xin.shape
        assert C == self.in_ch
        A, n_ch = self.n_anchors, self.n_ch
        OUT, OUTP = self.out_ch, self.out_ch_pad
        HW = H * W

        # --- pick the pixel-tile (lane) size under a VMEM budget -----------
        in_bytes = jnp.dtype(self.compute_dtype).itemsize
        tm = min(1024, _round_up(HW, 128))

        def vmem_est(t):
            return (2 * t * C * in_bytes        # double-buffered x tile
                    + 2 * t * OUTP * 4          # double-buffered out tile
                    + 2 * OUTP * C * in_bytes   # weight
                    + 4 * t * 4)                # xs/ys tiles

        while tm > 128 and vmem_est(tm) > (12 << 20):
            tm -= 128
        HW_pad = _round_up(HW, tm)
        n_tiles = HW_pad // tm

        # --- glue: NCHW -> (B, C, H*W), cast + pad in one pass -------------
        x3d = xin.reshape(B, C, HW).astype(self.compute_dtype)
        if HW_pad != HW:
            x3d = jnp.pad(x3d, ((0, 0), (0, 0), (0, HW_pad - HW)))

        p = jnp.arange(HW_pad, dtype=jnp.int32)
        xs = (p % W).astype(jnp.float32).reshape(1, HW_pad)     # grid i
        ys = (p // W).astype(jnp.float32).reshape(1, HW_pad)    # grid j

        row_spec = pl.BlockSpec((OUTP, 1), lambda b, t: (0, 0))
        pix_spec = pl.BlockSpec((1, tm), lambda b, t: (0, t))

        cost = pl.CostEstimate(
            flops=int(2 * B * HW_pad * C * OUTP),
            transcendentals=int(2 * B * HW_pad * OUTP),
            bytes_accessed=int(B * C * HW_pad * in_bytes
                               + OUTP * C * in_bytes
                               + B * OUTP * HW_pad * 4),
        )

        out3d = pl.pallas_call(
            _yolo_conv_decode_kernel,
            out_shape=jax.ShapeDtypeStruct((B, OUTP, HW_pad), jnp.float32),
            grid=(B, n_tiles),
            in_specs=[
                pl.BlockSpec((1, C, tm), lambda b, t: (b, 0, t)),   # x
                pl.BlockSpec((OUTP, C), lambda b, t: (0, 0)),       # weight
                row_spec,   # bias
                row_spec,   # sigmoid row mask
                row_spec,   # wh row mask
                row_spec,   # multiplier (stride / stride*anchor)
                row_spec,   # +stride on x rows
                row_spec,   # +stride on y rows
                pix_spec,   # xs
                pix_spec,   # ys
            ],
            out_specs=pl.BlockSpec((1, OUTP, tm), lambda b, t: (b, 0, t)),
            compiler_params=pltpu.CompilerParams(
                dimension_semantics=("parallel", "parallel"),
                vmem_limit_bytes=32 << 20),
            cost_estimate=cost,
        )(x3d, self._wt, self._bias, self._sig_row, self._wh_row,
          self._mul_row, self._addx_row, self._addy_row, xs, ys)

        # --- glue: (B, OUT, HW) -> pred.view(B, A*H*W, n_ch) ordering ------
        out = out3d[:, :OUT, :HW]                      # drop row/lane padding
        pred = out.reshape(B, A, n_ch, H, W)
        pred = jnp.transpose(pred, (0, 1, 3, 4, 2))    # (B, A, H, W, n_ch)
        return pred.reshape(B, A * H * W, n_ch)


def _reference_jax(layer, xin):
    """Pure-JAX reference of the labels=None forward (same compute dtype)."""
    B, C, H, W = xin.shape
    A, n_ch = layer.n_anchors, layer.n_ch
    cd = layer.compute_dtype
    out = jnp.einsum("bchw,oc->bohw", xin.astype(cd), layer.weight.astype(cd),
                     preferred_element_type=jnp.float32) + \
        layer.bias[None, :, None, None]
    out = out.reshape(B, A, n_ch, H, W).transpose(0, 1, 3, 4, 2)
    sig_idx = np.r_[:2, 4:n_ch]
    out = out.at[..., sig_idx].set(jax.nn.sigmoid(out[..., sig_idx]))
    x_shift = jnp.broadcast_to(jnp.arange(W, dtype=jnp.float32), (B, A, H, W))
    y_shift = jnp.broadcast_to(
        jnp.arange(H, dtype=jnp.float32).reshape(H, 1), (B, A, H, W))
    ma = jnp.asarray(layer.masked_anchors)
    w_a = jnp.broadcast_to(ma[:, 0].reshape(1, A, 1, 1), (B, A, H, W))
    h_a = jnp.broadcast_to(ma[:, 1].reshape(1, A, 1, 1), (B, A, H, W))
    pred = out
    pred = pred.at[..., 0].add(x_shift)
    pred = pred.at[..., 1].add(y_shift)
    pred = pred.at[..., 2].set(jnp.exp(pred[..., 2]) * w_a)
    pred = pred.at[..., 3].set(jnp.exp(pred[..., 3]) * h_a)
    pred = pred.at[..., :4].multiply(float(layer.stride))
    return pred.reshape(B, -1, n_ch)


if __name__ == "__main__":
    config_model = {
        "ANCHORS": [(10, 13), (16, 30), (33, 23),
                    (30, 61), (62, 45), (59, 119),
                    (116, 90), (156, 198), (373, 326)],
        "ANCH_MASK": [[6, 7, 8], [3, 4, 5], [0, 1, 2]],
        "N_CLASSES": 3,
    }
    layer_no = 0           # stride 32
    B, C, H, W = 2, 4, 16, 16

    layer = YOLOLayerPallas(config_model, layer_no, in_ch=C,
                            key=jax.random.PRNGKey(0))

    x = jax.random.normal(jax.random.PRNGKey(0), (B, C, H, W), jnp.float32)

    pred = jax.block_until_ready(layer(x))
    ref = jax.block_until_ready(_reference_jax(layer, x))

    assert pred.shape == (B, layer.n_anchors * H * W, layer.n_ch)
    np.testing.assert_allclose(np.asarray(pred), np.asarray(ref),
                               rtol=1e-4, atol=1e-4)
    print("KERNEL_OK")
</pallas_src>

<mosaic_0001>
module attributes {stable_mosaic.version = 11 : i64} {
  func.func @_yolo_conv_decode_kernel(%arg0: i32, %arg1: i32, %arg2: memref<1x4x256xbf16, #tpu.memory_space<vmem>>, %arg3: memref<24x4xbf16, #tpu.memory_space<vmem>>, %arg4: memref<24x1xf32, #tpu.memory_space<vmem>>, %arg5: memref<24x1xf32, #tpu.memory_space<vmem>>, %arg6: memref<24x1xf32, #tpu.memory_space<vmem>>, %arg7: memref<24x1xf32, #tpu.memory_space<vmem>>, %arg8: memref<24x1xf32, #tpu.memory_space<vmem>>, %arg9: memref<24x1xf32, #tpu.memory_space<vmem>>, %arg10: memref<1x256xf32, #tpu.memory_space<vmem>>, %arg11: memref<1x256xf32, #tpu.memory_space<vmem>>, %arg12: memref<1x24x256xf32, #tpu.memory_space<vmem>>) attributes {dimension_semantics = [#tpu.dimension_semantics<parallel>, #tpu.dimension_semantics<parallel>], iteration_bounds = array<i64: 2, 1>, scalar_prefetch = 0 : i64, scratch_operands = 0 : i64, tpu.core_type = #tpu.core_type<tc>, window_params = [{transform_indices = @transform_0, window_bounds = array<i64: 1, 4, 256>}, {pipeline_mode = #tpu.pipeline_mode<synchronous>, transform_indices = @transform_1, window_bounds = array<i64: 24, 4>}, {pipeline_mode = #tpu.pipeline_mode<synchronous>, transform_indices = @transform_2, window_bounds = array<i64: 24, 1>}, {pipeline_mode = #tpu.pipeline_mode<synchronous>, transform_indices = @transform_3, window_bounds = array<i64: 24, 1>}, {pipeline_mode = #tpu.pipeline_mode<synchronous>, transform_indices = @transform_4, window_bounds = array<i64: 24, 1>}, {pipeline_mode = #tpu.pipeline_mode<synchronous>, transform_indices = @transform_5, window_bounds = array<i64: 24, 1>}, {pipeline_mode = #tpu.pipeline_mode<synchronous>, transform_indices = @transform_6, window_bounds = array<i64: 24, 1>}, {pipeline_mode = #tpu.pipeline_mode<synchronous>, transform_indices = @transform_7, window_bounds = array<i64: 24, 1>}, {transform_indices = @transform_8, window_bounds = array<i64: 1, 256>}, {transform_indices = @transform_9, window_bounds = array<i64: 1, 256>}, {transform_indices = @transform_10, window_bounds = array<i64: 1, 24, 256>}]} {
    %c0 = arith.constant 0 : index
    %c0_0 = arith.constant 0 : index
    %c0_1 = arith.constant 0 : index
    %0 = vector.load %arg2[%c0, %c0_0, %c0_1] : memref<1x4x256xbf16, #tpu.memory_space<vmem>>, vector<1x4x256xbf16>
    %1 = vector.shape_cast %0 : vector<1x4x256xbf16> to vector<4x256xbf16>
    %c0_2 = arith.constant 0 : index
    %c0_3 = arith.constant 0 : index
    %2 = vector.load %arg3[%c0_2, %c0_3] : memref<24x4xbf16, #tpu.memory_space<vmem>>, vector<24x4xbf16>
    %cst = arith.constant dense<0.000000e+00> : vector<24x256xf32>
    %3 = tpu.matmul %2, %1, %cst {dimension_numbers = #tpu.dot_dimension_numbers<[1], [0], [0], [1], [0, 0, 1, 1], [], []>} : vector<24x4xbf16>, vector<4x256xbf16>, vector<24x256xf32> -> vector<24x256xf32>
    %c0_4 = arith.constant 0 : index
    %c0_5 = arith.constant 0 : index
    %4 = vector.load %arg4[%c0_4, %c0_5] : memref<24x1xf32, #tpu.memory_space<vmem>>, vector<24x1xf32>
    %5 = vector.broadcast %4 : vector<24x1xf32> to vector<24x256xf32>
    %6 = arith.addf %3, %5 : vector<24x256xf32>
    %c0_6 = arith.constant 0 : index
    %c0_7 = arith.constant 0 : index
    %7 = vector.load %arg5[%c0_6, %c0_7] : memref<24x1xf32, #tpu.memory_space<vmem>>, vector<24x1xf32>
    %8 = vector.shape_cast %7 : vector<24x1xf32> to vector<24x1xf32>
    %9 = vector.broadcast %8 : vector<24x1xf32> to vector<24x256xf32>
    %cst_8 = arith.constant 0.000000e+00 : f32
    %10 = vector.broadcast %cst_8 : f32 to vector<24x256xf32>
    %11 = arith.cmpf ogt, %9, %10 : vector<24x256xf32>
    %c0_9 = arith.constant 0 : index
    %c0_10 = arith.constant 0 : index
    %12 = vector.load %arg6[%c0_9, %c0_10] : memref<24x1xf32, #tpu.memory_space<vmem>>, vector<24x1xf32>
    %13 = vector.shape_cast %12 : vector<24x1xf32> to vector<24x1xf32>
    %14 = vector.broadcast %13 : vector<24x1xf32> to vector<24x256xf32>
    %cst_11 = arith.constant 0.000000e+00 : f32
    %15 = vector.broadcast %cst_11 : f32 to vector<24x256xf32>
    %16 = arith.cmpf ogt, %14, %15 : vector<24x256xf32>
    %17 = arith.negf %6 : vector<24x256xf32>
    %18 = math.exp %17 : vector<24x256xf32>
    %cst_12 = arith.constant 1.000000e+00 : f32
    %19 = vector.broadcast %cst_12 : f32 to vector<24x256xf32>
    %20 = arith.addf %19, %18 : vector<24x256xf32>
    %21 = arith.divf %19, %20 : vector<24x256xf32>
    %22 = arith.select %11, %21, %6 : vector<24x256xi1>, vector<24x256xf32>
    %23 = math.exp %22 : vector<24x256xf32>
    %24 = arith.select %16, %23, %22 : vector<24x256xi1>, vector<24x256xf32>
    %c0_13 = arith.constant 0 : index
    %c0_14 = arith.constant 0 : index
    %25 = vector.load %arg10[%c0_13, %c0_14] : memref<1x256xf32, #tpu.memory_space<vmem>>, vector<1x256xf32>
    %26 = vector.shape_cast %25 : vector<1x256xf32> to vector<1x256xf32>
    %27 = vector.broadcast %26 : vector<1x256xf32> to vector<24x256xf32>
    %c0_15 = arith.constant 0 : index
    %c0_16 = arith.constant 0 : index
    %28 = vector.load %arg11[%c0_15, %c0_16] : memref<1x256xf32, #tpu.memory_space<vmem>>, vector<1x256xf32>
    %29 = vector.shape_cast %28 : vector<1x256xf32> to vector<1x256xf32>
    %30 = vector.broadcast %29 : vector<1x256xf32> to vector<24x256xf32>
    %c0_17 = arith.constant 0 : index
    %c0_18 = arith.constant 0 : index
    %31 = vector.load %arg7[%c0_17, %c0_18] : memref<24x1xf32, #tpu.memory_space<vmem>>, vector<24x1xf32>
    %32 = vector.broadcast %31 : vector<24x1xf32> to vector<24x256xf32>
    %33 = arith.mulf %32, %24 : vector<24x256xf32>
    %c0_19 = arith.constant 0 : index
    %c0_20 = arith.constant 0 : index
    %34 = vector.load %arg8[%c0_19, %c0_20] : memref<24x1xf32, #tpu.memory_space<vmem>>, vector<24x1xf32>
    %35 = vector.broadcast %34 : vector<24x1xf32> to vector<24x256xf32>
    %36 = arith.mulf %35, %27 : vector<24x256xf32>
    %37 = arith.addf %33, %36 : vector<24x256xf32>
    %c0_21 = arith.constant 0 : index
    %c0_22 = arith.constant 0 : index
    %38 = vector.load %arg9[%c0_21, %c0_22] : memref<24x1xf32, #tpu.memory_space<vmem>>, vector<24x1xf32>
    %39 = vector.broadcast %38 : vector<24x1xf32> to vector<24x256xf32>
    %40 = arith.mulf %39, %30 : vector<24x256xf32>
    %41 = arith.addf %37, %40 : vector<24x256xf32>
    %c0_23 = arith.constant 0 : index
    %c0_24 = arith.constant 0 : index
    %c0_25 = arith.constant 0 : index
    %42 = vector.load %arg12[%c0_23, %c0_24, %c0_25] : memref<1x24x256xf32, #tpu.memory_space<vmem>>, vector<1x24x256xf32>
    %43 = vector.shape_cast %42 : vector<1x24x256xf32> to vector<24x256xf32>
    %44 = vector.shape_cast %41 : vector<24x256xf32> to vector<1x24x256xf32>
    tpu.vector_store %arg12[%c0_23, %c0_24, %c0_25], %44 {strides = array<i32>} : memref<1x24x256xf32, #tpu.memory_space<vmem>>, vector<1x24x256xf32>,
    return
  }
  func.func @transform_0(%arg0: i32, %arg1: i32) -> (i32, i32, i32) {
    %c0_i32 = arith.constant 0 : i32
    %c0_i32_0 = arith.constant 0 : i32
    return %arg0, %c0_i32, %arg1 : i32, i32, i32
  }
  func.func @transform_1(%arg0: i32, %arg1: i32) -> (i32, i32) {
    %c0_i32 = arith.constant 0 : i32
    %c0_i32_0 = arith.constant 0 : i32
    %c0_i32_1 = arith.constant 0 : i32
    return %c0_i32, %c0_i32_0 : i32, i32
  }
  func.func @transform_2(%arg0: i32, %arg1: i32) -> (i32, i32) {
    %c0_i32 = arith.constant 0 : i32
    %c0_i32_0 = arith.constant 0 : i32
    %c0_i32_1 = arith.constant 0 : i32
    return %c0_i32, %c0_i32_0 : i32, i32
  }
  func.func @transform_3(%arg0: i32, %arg1: i32) -> (i32, i32) {
    %c0_i32 = arith.constant 0 : i32
    %c0_i32_0 = arith.constant 0 : i32
    %c0_i32_1 = arith.constant 0 : i32
    return %c0_i32, %c0_i32_0 : i32, i32
  }
  func.func @transform_4(%arg0: i32, %arg1: i32) -> (i32, i32) {
    %c0_i32 = arith.constant 0 : i32
    %c0_i32_0 = arith.constant 0 : i32
    %c0_i32_1 = arith.constant 0 : i32
    return %c0_i32, %c0_i32_0 : i32, i32
  }
  func.func @transform_5(%arg0: i32, %arg1: i32) -> (i32, i32) {
    %c0_i32 = arith.constant 0 : i32
    %c0_i32_0 = arith.constant 0 : i32
    %c0_i32_1 = arith.constant 0 : i32
    return %c0_i32, %c0_i32_0 : i32, i32
  }
  func.func @transform_6(%arg0: i32, %arg1: i32) -> (i32, i32) {
    %c0_i32 = arith.constant 0 : i32
    %c0_i32_0 = arith.constant 0 : i32
    %c0_i32_1 = arith.constant 0 : i32
    return %c0_i32, %c0_i32_0 : i32, i32
  }
  func.func @transform_7(%arg0: i32, %arg1: i32) -> (i32, i32) {
    %c0_i32 = arith.constant 0 : i32
    %c0_i32_0 = arith.constant 0 : i32
    %c0_i32_1 = arith.constant 0 : i32
    return %c0_i32, %c0_i32_0 : i32, i32
  }
  func.func @transform_8(%arg0: i32, %arg1: i32) -> (i32, i32) {
    %c0_i32 = arith.constant 0 : i32
    %c0_i32_0 = arith.constant 0 : i32
    return %c0_i32, %arg1 : i32, i32
  }
  func.func @transform_9(%arg0: i32, %arg1: i32) -> (i32, i32) {
    %c0_i32 = arith.constant 0 : i32
    %c0_i32_0 = arith.constant 0 : i32
    return %c0_i32, %arg1 : i32, i32
  }
  func.func @transform_10(%arg0: i32, %arg1: i32) -> (i32, i32, i32) {
    %c0_i32 = arith.constant 0 : i32
    %c0_i32_0 = arith.constant 0 : i32
    return %arg0, %c0_i32, %arg1 : i32, i32, i32
  }
}

</mosaic_0001>

<bundles_post_ra>
// kernel: tpu_custom_call.1
= control target key start
LH: loop header
LB: loop body
LE: loop exit
PB: predicated region body
PF: predicated region fallthrough
CT: control target
= control target key end

     0   :  { %15 = vsyncpa [#allocation3], 0  ;;  %s1541_s0 = inlined_call_operand.vmem [shape: bf16[2,4,256], index: 0, kind: input, shape index: {}]   ;;  %s1542_s1 = inlined_call_operand.vmem [shape: bf16[24,4], index: 1, kind: input, shape index: {}]   ;;  %s1543_s2 = inlined_call_operand.vmem [shape: f32[24,1], index: 2, kind: input, shape index: {}]   ;;  %s1544_s3 = inlined_call_operand.vmem [shape: f32[24,1], index: 3, kind: input, shape index: {}]   ;;  %s1545_s4 = inlined_call_operand.vmem [shape: f32[24,1], index: 4, kind: input, shape index: {}]   ;;  %s1546_s5 = inlined_call_operand.vmem [shape: f32[24,1], index: 5, kind: input, shape index: {}]   ;;  %s1547_s6 = inlined_call_operand.vmem [shape: f32[24,1], index: 6, kind: input, shape index: {}]   ;;  %s1548_s7 = inlined_call_operand.vmem [shape: f32[24,1], index: 7, kind: input, shape index: {}]   ;;  %s1549_s8 = inlined_call_operand.vmem [shape: f32[1,256], index: 8, kind: input, shape index: {}]   ;;  %s1550_s9 = inlined_call_operand.vmem [shape: f32[1,256], index: 9, kind: input, shape index: {}]   ;;  %s1551_s10 = inlined_call_operand.hbm [shape: f32[2,24,256], index: 10, kind: output, shape index: {}]  }
   0x1   :  { %17 = vsyncpa [#allocation3 + $0x1], 0  ;;  %s1180_s13 = smov 0   ;;  %s1182_s14 = smov 0  }
   0x2   :  { %s1184_s15 = smov 0   ;;  %s1186_s16 = smov 0  }
   0x3   :  { %s1188_s17 = smov 0   ;;  %s1190_s18 = smov 0  }
   0x4 LB: > { %1554 = sst [smem:[#allocation5_spill]] %s1116_s17  ;;  %s913_s19 = sadd.s32 4294967295, %s1120_s18   ;;  %s1120_s18 = sphi %s1190_s18, %s23_s18   ;;  %s1116_s17 = sphi %s1188_s17, %s1569_s17   ;;  %s1112_s16 = sphi %s1186_s16, %s1568_s16   ;;  %s1108_s15 = sphi %s1184_s15, %s1572_s15   ;;  %s1104_s14 = sphi %s1182_s14, %s1571_s14   ;;  %s1100_s13 = sphi %s1180_s13, %s1570_s13  }
   0x5   : > { %s914_s20 = sadd.s32 4294967294, %s1120_s18   ;;  %s35_s21 = sadd.s32 1, %s1116_s17 }
   0x6   : > { %s271_s22 = sadd.s32 1, %s1108_s15  ;;  %p37_p0 = scmp.ge.s32.totalorder %s35_s21, 2 }
   0x7   : > { %p281_p1 = scmp.ne.s32.totalorder %s1108_s15, %s1104_s14  ;;  %p282_p2 = scmp.eq.s32.totalorder %s913_s19, 1 }
   0x8   : > { %p287_p3 = scmp.ne.s32.totalorder %s1104_s14, %s1100_s13  ;;  %s1574_s21 = smov (%p37_p0, %s35_s21), 0 }
   0x9   : > { %1555 = sst [smem:[#allocation6_spill]] %s1574_s21  ;;  %p1220_p4 = por %p282_p2, %p281_p1 }
   0xa   : > { %p288_p5 = scmp.eq.s32.totalorder %s914_s20, 1  ;;  %s266_s24 = ssub.s32 %s1116_s17, %s1574_s21 }
   0xb   : > { %p919_p6 = scmp.ge.s32.totalorder %s1120_s18, 1  ;;  %p269_p7 = scmp.eq.s32.totalorder %s266_s24, 0 }
   0xc   : > { %p1227_p8 = por %p288_p5, %p287_p3  ;;  %p356_p9 = scmp.lt.s32.totalorder %s1120_s18, 3 }
   0xd   : > { %s1233_s26 = scalar_select %p269_p7, %s1108_s15, %s271_s22  }
   0xe   : > { %p357_p10 = pnand %p919_p6, %p356_p9 }
   0xf   : > { %p407_p11 = scmp.lt.s32.totalorder (!%p357_p10), %s1112_s16, 1  ;;  %s403_s28 = sand.u32 (!%p357_p10), 1, %s1104_s14  }
  0x10   : > { %360 = sbr.rel (%p357_p10) target bundleno = 228 (0xe4), region = 60  ;;  %s793_s22 = scalar_lea.sflag (!%p357_p10), [#allocation3], %s403_s28 }
  0x11   : > { %s943_s29 = smul.u32 (!%p357_p10), 48, %s403_s28 }
  0x12   : > { %s944_s12 = smul.u32 (!%p357_p10), 48, %s1112_s16 }
  0x13   : > { %s1483_s30 = scalar_lea.vmem (!%p357_p10), [#allocation2], %s943_s29 }
  0x14   : > { %s806_s19 = scalar_lea.hbm (!%p357_p10), %s1551_s10, %s944_s12  ;;  %s807_s21 = sshll.u32 (!%p357_p10), %s1483_s30, 4  ;;  %s808_s21 = int_to_ptr.vmem [resolvable:$true] %s807_s21 }
  0x15   : > { %v434_v0 = vld [vmem:[%s1543_s2 + $0x10] sm:$0xff]  ;;  %v432_v1 = vld [vmem:[%s1543_s2] sm:$0xff]  ;;  %v1122_v2 = vmov 0   ;;  %s408_s11 = scalar_select %p407_p11, %s1112_s16, 1  ;;  %v511_v3 = vld [vmem:[%s1544_s3 + $0x8] sm:$0xff]  ;;  %vm469_vm0 = vcmask 1041408  }
  0x16   : > { %1004 = vset.pattern.permute.xlu1 %v1122_v2  ;;  %1003 = vset.pattern.permute.xlu0 %v1122_v2  ;;  %v510_v5 = vld [vmem:[%s1544_s3] sm:$0xff]  ;;  %v433_v6 = vld [vmem:[%s1543_s2 + $0x8] sm:$0xff]  ;;  %v512_v8 = vld [vmem:[%s1544_s3 + $0x10] sm:$0xff]  ;;  %vm462_vm1 = vcmask 31744   ;;  %s1062_s12 = scalar_lea.hbm %s1551_s10, 96 }
  0x17   : > { %447 = vperm.xlu1 %1004, %v434_v0   ;;  %437 = vperm.xlu0 %1003, %v432_v1   ;;  %s939_s20 = sshll.u32 %s408_s11, 2  ;;  %v431_v7 = vld [vmem:[%s1542_s1 + $0x8] sm:$0xf]  ;;  %v531_v15 = vld [vmem:[%s1545_s4] sm:$0xff]  ;;  %v533_v18 = vld [vmem:[%s1545_s4 + $0x10] sm:$0xff] }
  0x18   : > { %1005 = vset.pattern.permute.xlu2 %v1122_v2  ;;  %s414_s27 = scalar_lea.vmem %s1541_s0, %s939_s20  ;;  %v455_v9 = vunpack.c.l.b16 %v431_v7  ;;  %v532_v14 = vld [vmem:[%s1545_s4 + $0x8] sm:$0xff]  ;;  %v940_v16 = vld [vmem:[%s1542_s1] sm:$0xff]  ;;  %v704_v21 = vld [vmem:[%s1546_s5 + $0x10] sm:$0xff]  ;;  %s809_s20 = sshll.u32 %s806_s19, 4  ;;  %s810_s20 = int_to_ptr.hbm [resolvable:$true] %s809_s20 }
  0x19   : > { %520 = vperm.xlu2 %1005, %v511_v3   ;;  %v428_v4 = vld [vmem:[%s414_s27] sm:$0xf]  ;;  %v703_v19 = vld [vmem:[%s1546_s5 + $0x8] sm:$0xff]  ;;  %v728_v24 = vld [vmem:[%s1547_s6 + $0x10] sm:$0xff]  ;;  %s1056_s17 = sshra.s32 %s810_s20, 4  ;;  %s1057_s17 = int_to_ptr.hbm [resolvable:$true] %s1056_s17 }
  0x1a   : > { %459 = vst [vmem:[#allocation1] ss:$4 sm:$0xff] %v428_v4  ;;  %v457_v17 = vpack.c.b16 %v455_v9, %v455_v9  ;;  %v702_v20 = vld [vmem:[%s1546_s5] sm:$0xff]  ;;  %v727_v22 = vld [vmem:[%s1547_s6 + $0x8] sm:$0xff]  ;;  %v758_v27 = vld [vmem:[%s1548_s7 + $0x10] sm:$0xff]  ;;  %s1058_s24 = scalar_lea.hbm %s1057_s17, 48  ;;  %p1063_p1 = scmp.lt.s32.totalorder %s1057_s17, %s1551_s10 }
  0x1b   : > { %v726_v23 = vld [vmem:[%s1547_s6] sm:$0xff]  ;;  %v757_v25 = vld [vmem:[%s1548_s7 + $0x8] sm:$0xff]  ;;  %p1059_p12 = scmp.ne.s32.totalorder %s1057_s17, %s1058_s24  ;;  %p1064_p2 = scmp.lt.s32.totalorder %s1062_s12, %s1058_s24 }
  0x1c   : > { %v756_v26 = vld [vmem:[%s1548_s7] sm:$0xff] }
  0x1d   : > { %v690_v58 = vld [vmem:[%s1549_s8] sm:$0x3]  ;;  %p1060_p13 = pnand %p1059_p12, %p1220_p4  ;;  %p1065_p3 = por %p1064_p2, %p1063_p1 }
  0x1e   : > { %v1337_v61 = vperm.slane %v690_v58, 0  ;;  %v696_v1 = vld [vmem:[%s1550_s9] sm:$0x3] }
  0x1f   : > { %515 = vperm.xlu1 %1004, %v510_v5   ;;  %442 = vperm.xlu0 %1003, %v433_v6   ;;  %p1061_p0 = pneg %p1060_p13 }
  0x21   : > { %525 = vperm.xlu2 %1005, %v512_v8   ;;  %v460_v10 = vld.sshfl [vmem:[#allocation1] sm:$0xff pattern:$0x73625140]  ;;  %v461_v11 = vld.sshfl [vmem:[#allocation1 + $0x8] sm:$0xff pattern:$0x73625140]  ;;  %p1066_p5 = pnand %p1065_p3, %p1061_p0 }
  0x22   : > { %v470_v12 = vsel %vm469_vm0, %v460_v10, 0  ;;  %v472_v13 = vsel %vm469_vm0, %v461_v11, 0  ;;  %v1351_v8 = vperm.slane %v690_v58, 1 }
  0x23   : > { %481 = vmatpush.bf16.msra.mxu0 %v470_v12  ;;  %941 = vmatpush.bf16.msra.mxu2 %v470_v12  ;;  %v1360_v12 = vperm.slane %v696_v1, 0 }
  0x24   : > { %499 = vmatpush.bf16.msra.mxu1 %v472_v13  ;;  %942 = vmatpush.bf16.msra.mxu3 %v472_v13  ;;  %v1362_v13 = vperm.slane %v696_v1, 1 }
  0x26   : > { %926 = vmatmul.msk.bf16.vlgmr.msra.gmra.mxu0 %vm462_vm1, %v940_v16  ;;  %927 = vmatmul.msk.bf16.vlgmr.msra.gmra.mxu2 %vm462_vm1, %v457_v17 }
  0x27   : > { %541 = vperm.xlu1 %1004, %v532_v14   ;;  %536 = vperm.xlu0 %1003, %v531_v15  }
  0x28   : > { %928 = vmatmul.msk.bf16.vlgmr.msra.gmra.mxu1 %vm462_vm1, %v940_v16  ;;  %929 = vmatmul.msk.bf16.vlgmr.msra.gmra.mxu3 %vm462_vm1, %v457_v17 }
  0x29   : > { %546 = vperm.xlu2 %1005, %v533_v18  }
  0x2f   : > { %712 = vperm.xlu1 %1004, %v703_v19   ;;  %707 = vperm.xlu0 %1003, %v702_v20  }
  0x31   : > { %717 = vperm.xlu2 %1005, %v704_v21  }
  0x37   : > { %736 = vperm.xlu1 %1004, %v727_v22   ;;  %731 = vperm.xlu0 %1003, %v726_v23  }
  0x39   : > { %741 = vperm.xlu2 %1005, %v728_v24  }
  0x3f   : > { %766 = vperm.xlu1 %1004, %v757_v25   ;;  %761 = vperm.xlu0 %1003, %v756_v26  }
  0x41   : > { %771 = vperm.xlu2 %1005, %v758_v27  }
  0x73   : > { %v1300_v30 = vpop.permute.xlu2 %520 }
  0x7b   : > { %v1310_v39 = vpop.permute.xlu2 %525 }
  0x7c   : > { %vm530_vm11 = vcmp.gt.f32.partialorder %v1310_v39, 0.0 }
  0x83   : > { %v1339_v63 = vpop.permute.xlu2 %546 }
  0x89   : > { %v438_v28 = vpop.permute.xlu0 %437  ;;  %v448_v35 = vpop.permute.xlu1 %447 }
  0x91   : > { %v443_v29 = vpop.permute.xlu0 %442  ;;  %v1325_v54 = vpop.permute.xlu1 %515 }
  0x92   : > { %vm528_vm4 = vcmp.gt.f32.partialorder %v1325_v54, 0.0 }
  0x99   : > { %v1302_v31 = vpop.permute.xlu0 %536  ;;  %v1369_v17 = vpop.permute.xlu1 %541 }
  0xa1   : > { %v1312_v41 = vpop.permute.xlu0 %707 }
  0xa3   : > { %v483_v32 = vpop.f32.mrf.mxu0 }
  0xa4   : > { %v1304_v33 = vadd.f32 %v483_v32, %v438_v28 }
  0xa5   : > { %v501_v34 = vpop.f32.mrf.mxu1 }
  0xa6   : > { %v1306_v36 = vadd.f32 %v501_v34, %v438_v28  ;;  %v930_v37 = vmul.f32 -1.442695, %v1304_v33 }
  0xa8   : > { %v931_v38 = vmul.f32 -1.442695, %v1306_v36  ;;  %1006 = vpow2.f32 %v930_v37 }
  0xa9   : > { %v488_v40 = vpop.f32.mrf.mxu2  ;;  %v1341_v0 = vpop.permute.xlu0 %731 }
  0xaa   : > { %1008 = vpow2.f32 %v931_v38  ;;  %v1314_v42 = vadd.f32 %v488_v40, %v448_v35  ;;  %v1357_v11 = vmul.f32 %v1341_v0, %v1337_v61 }
  0xab   : > { %v506_v43 = vpop.f32.mrf.mxu3  ;;  %v485_v45 = vpop.f32.mrf.mxu0 }
  0xac   : > { %v1316_v44 = vadd.f32 %v506_v43, %v448_v35  ;;  %v934_v46 = vmul.f32 -1.442695, %v1314_v42  ;;  %v1319_v47 = vadd.f32 %v485_v45, %v443_v29  ;;  %v1391_v43 = vpop.permute.xlu2 %717 }
  0xad   : > { %v503_v48 = vpop.f32.mrf.mxu1 }
  0xae   : > { %v935_v49 = vmul.f32 -1.442695, %v1316_v44  ;;  %v1322_v50 = vadd.f32 %v503_v48, %v443_v29  ;;  %v1007_v51 = vpop.eup %1006  ;;  %1010 = vpow2.f32 %v934_v46  ;;  %v932_v52 = vmul.f32 -1.442695, %v1319_v47 }
  0xaf   : > { %v1327_v55 = vadd.f32 1.0, %v1007_v51 }
  0xb0   : > { %v1009_v53 = vpop.eup %1008  ;;  %1012 = vpow2.f32 %v935_v49  ;;  %v933_v56 = vmul.f32 -1.442695, %v1322_v50 }
  0xb1   : > { %v1330_v57 = vadd.f32 1.0, %v1009_v53  ;;  %1014 = vpow2.f32 %v932_v52  ;;  %v490_v59 = vpop.f32.mrf.mxu2  ;;  %v585_v3 = vand.u32 2147483647, %v1327_v55  ;;  %v587_v4 = vand.u32 2147483648, %v1327_v55 }
  0xb2   : > { %1016 = vrcp.f32 %v1327_v55  ;;  %vm581_vm2 = vweird.f32 %v1327_v55 }
  0xb3   : > { %1018 = vrcp.f32 %v1330_v57  ;;  %v508_v60 = vpop.f32.mrf.mxu3  ;;  %v600_v7 = vand.u32 2147483647, %v1330_v57  ;;  %vm596_vm3 = vweird.f32 %v1330_v57  ;;  %vm1371_vm5 = vcmp.eq.f32.partialorder %v585_v3, 8.507059e+37 }
  0xb4   : > { %1020 = vpow2.f32 %v933_v56  ;;  %v1011_v62 = vpop.eup %1010  ;;  %v588_v19 = vor.u32 1.1754944e-38, %v587_v4  ;;  %v602_v21 = vand.u32 2147483648, %v1330_v57  ;;  %v1421_v4 = vpop.permute.xlu1 %712 }
  0xb5   : > { %v1348_v5 = vadd.f32 1.0, %v1011_v62  ;;  %vm1377_vm6 = vcmp.eq.f32.partialorder %v600_v7, 8.507059e+37 }
  0xb6   : > { %v1013_v2 = vpop.eup %1012  ;;  %v603_v38 = vor.u32 1.1754944e-38, %v602_v21 }
  0xb7   : > { %v1015_v6 = vpop.eup %1014  ;;  %v1353_v9 = vadd.f32 1.0, %v1013_v2  ;;  %1022 = vrcp.f32 %v1348_v5  ;;  %v645_v24 = vand.u32 2147483647, %v1348_v5  ;;  %v647_v27 = vand.u32 2147483648, %v1348_v5 }
  0xb8   : > { %v1017_v10 = vpop.eup %1016  ;;  %v1382_v25 = vadd.f32 1.0, %v1015_v6  ;;  %vm641_vm9 = vweird.f32 %v1348_v5 }
  0xb9   : > { %v1019_v14 = vpop.eup %1018  ;;  %v577_v15 = vmul.f32 %v1017_v10, %v1327_v55  ;;  %1024 = vrcp.f32 %v1353_v9  ;;  %vm582_vm7 = vweird.f32 %v1017_v10  ;;  %v660_v32 = vand.u32 2147483647, %v1353_v9 }
  0xba   : > { %v1021_v16 = vpop.eup %1020  ;;  %v592_v20 = vmul.f32 %v1019_v14, %v1330_v57  ;;  %v662_v34 = vand.u32 2147483648, %v1353_v9  ;;  %1026 = vrcp.f32 %v1382_v25  ;;  %vm597_vm8 = vweird.f32 %v1019_v14  ;;  %vm583_vm12 = vmor %vm581_vm2, %vm582_vm7 }
  0xbb   : > { %v578_v22 = vsub.f32 1.0, %v577_v15  ;;  %v1385_v28 = vadd.f32 1.0, %v1021_v16  ;;  %vm656_vm10 = vweird.f32 %v1353_v9  ;;  %vm1400_vm13 = vcmp.eq.f32.partialorder %v645_v24, 8.507059e+37  ;;  %vm598_vm14 = vmor %vm596_vm3, %vm597_vm8 }
  0xbc   : > { %v593_v26 = vsub.f32 1.0, %v592_v20  ;;  %v648_v51 = vor.u32 1.1754944e-38, %v647_v27  ;;  %vm1408_vm15 = vcmp.eq.f32.partialorder %v660_v32, 8.507059e+37  ;;  %v663_v55 = vor.u32 1.1754944e-38, %v662_v34  ;;  %v742_v27 = vpop.permute.xlu2 %741 }
  0xbd   : > { %v579_v29 = vmul.f32 %v1017_v10, %v578_v22  ;;  %v1023_v35 = vpop.eup %1022  ;;  %1028 = vrcp.f32 %v1385_v28  ;;  %vm611_vm1 = vweird.f32 %v1382_v25  ;;  %vm549_vm3 = vcmp.gt.f32.partialorder %v1302_v31, 0.0 }
  0xbe   : > { %v594_v37 = vmul.f32 %v1019_v14, %v593_v26  ;;  %v637_v46 = vmul.f32 %v1023_v35, %v1348_v5  ;;  %vm642_vm0 = vweird.f32 %v1023_v35  ;;  %v615_v18 = vand.u32 2147483647, %v1382_v25 }
  0xbf   : > { %v1025_v40 = vpop.eup %1024  ;;  %v580_v45 = vadd.f32 %v1017_v10, %v579_v29  ;;  %v630_v22 = vand.u32 2147483647, %v1385_v28 }
  0xc0   : > { %v595_v48 = vadd.f32 %v1019_v14, %v594_v37  ;;  %v652_v52 = vmul.f32 %v1025_v40, %v1353_v9  ;;  %v638_v56 = vsub.f32 1.0, %v637_v46  ;;  %v1027_v1 = vpop.eup %1026  ;;  %vm657_vm2 = vweird.f32 %v1025_v40 }
  0xc1   : > { %v584_v53 = vsel %vm583_vm12, %v1017_v10, %v580_v45  ;;  %vm612_vm7 = vweird.f32 %v1027_v1  ;;  %v632_v9 = vand.u32 2147483648, %v1385_v28  ;;  %vm626_vm12 = vweird.f32 %v1385_v28 }
  0xc2   : > { %v589_v59 = vsel %vm1371_vm5, %v588_v19, %v584_v53  ;;  %v599_v60 = vsel %vm598_vm14, %v1019_v14, %v595_v48  ;;  %v653_v62 = vsub.f32 1.0, %v652_v52  ;;  %v639_v3 = vmul.f32 %v1023_v35, %v638_v56  ;;  %v737_v52 = vpop.permute.xlu1 %736 }
  0xc3   : > { %v666_v57 = vsel %vm528_vm4, %v589_v59, %v1304_v33  ;;  %v604_v2 = vsel %vm1377_vm6, %v603_v38, %v599_v60  ;;  %v607_v14 = vmul.f32 %v1027_v1, %v1382_v25  ;;  %v1029_v15 = vpop.eup %1028  ;;  %vm529_vm5 = vcmp.gt.f32.partialorder %v1300_v30, 0.0  ;;  %vm643_vm6 = vmor %vm641_vm9, %vm642_vm0 }
  0xc4   : > { %v672_v6 = vmul.f32 1.442695, %v666_v57  ;;  %v667_v7 = vsel %vm528_vm4, %v604_v2, %v1306_v36  ;;  %v654_v10 = vmul.f32 %v1025_v40, %v653_v62  ;;  %v640_v16 = vadd.f32 %v1023_v35, %v639_v3  ;;  %vm658_vm4 = vmor %vm656_vm10, %vm657_vm2 }
  0xc5   : > { %v674_v33 = vmul.f32 1.442695, %v667_v7  ;;  %v617_v19 = vand.u32 2147483648, %v1382_v25  ;;  %v608_v54 = vsub.f32 1.0, %v607_v14  ;;  %v622_v36 = vmul.f32 %v1029_v15, %v1385_v28  ;;  %vm613_vm9 = vmor %vm611_vm1, %vm612_vm7  ;;  %v762_v28 = vpop.permute.xlu0 %761 }
  0xc6   : > { %1030 = vpow2.f32 %v672_v6  ;;  %v655_v20 = vadd.f32 %v1025_v40, %v654_v10  ;;  %v644_v21 = vsel %vm643_vm6, %v1023_v35, %v640_v16  ;;  %vm627_vm8 = vweird.f32 %v1029_v15 }
  0xc7   : > { %1032 = vpow2.f32 %v674_v33  ;;  %v649_v23 = vsel %vm1400_vm13, %v648_v51, %v644_v21  ;;  %v609_v5 = vmul.f32 %v1027_v1, %v608_v54  ;;  %v623_v26 = vsub.f32 1.0, %v622_v36 }
  0xc8   : > { %v659_v24 = vsel %vm658_vm4, %v1025_v40, %v655_v20  ;;  %v670_v29 = vsel %vm530_vm11, %v649_v23, %v1314_v42  ;;  %vm616_vm10 = vcmp.eq.f32.partialorder %v615_v18, 8.507059e+37  ;;  %v618_v42 = vor.u32 1.1754944e-38, %v617_v19 }
  0xc9   : > { %v664_v32 = vsel %vm1408_vm15, %v663_v55, %v659_v24  ;;  %v680_v34 = vmul.f32 1.442695, %v670_v29  ;;  %v610_v37 = vadd.f32 %v1027_v1, %v609_v5  ;;  %v624_v38 = vmul.f32 %v1029_v15, %v623_v26 }
  0xca   : > { %v671_v35 = vsel %vm530_vm11, %v664_v32, %v1316_v44  ;;  %vm1454_vm13 = vcmp.eq.f32.partialorder %v630_v22, 8.507059e+37  ;;  %vm628_vm11 = vmor %vm626_vm12, %vm627_vm8  ;;  %v633_v51 = vor.u32 1.1754944e-38, %v632_v9  ;;  %v745_v60 = vmul.f32 %v1341_v0, %v1351_v8  ;;  %v767_v22 = vpop.permute.xlu1 %766 }
  0xcb   : > { %v682_v40 = vmul.f32 1.442695, %v671_v35  ;;  %1034 = vpow2.f32 %v680_v34  ;;  %v614_v46 = vsel %vm613_vm9, %v1027_v1, %v610_v37  ;;  %v625_v48 = vadd.f32 %v1029_v15, %v624_v38 }
  0xcc   : > { %v1031_v45 = vpop.eup %1030  ;;  %v619_v25 = vsel %vm616_vm10, %v618_v42, %v614_v46  ;;  %v774_v2 = vmul.f32 %v762_v28, %v1360_v12  ;;  %vm551_vm14 = vcmp.gt.f32.partialorder %v1339_v63, 0.0  ;;  %v748_v30 = vmul.f32 %v742_v27, %v1337_v61 }
  0xcd   : > { %v1033_v44 = vpop.eup %1032  ;;  %v684_v49 = vsel %vm549_vm3, %v1031_v45, %v666_v57  ;;  %1036 = vpow2.f32 %v682_v40  ;;  %v668_v58 = vsel %vm529_vm5, %v619_v25, %v1319_v47  ;;  %v629_v55 = vsel %vm628_vm11, %v1029_v15, %v625_v48 }
  0xce   : > { %v685_v53 = vsel %vm549_vm3, %v1033_v44, %v667_v7  ;;  %v720_v56 = vmul.f32 %v1312_v41, %v684_v49  ;;  %v676_v62 = vmul.f32 1.442695, %v668_v58  ;;  %v634_v1 = vsel %vm1454_vm13, %v633_v51, %v629_v55 }
  0xcf   : > { %v721_v59 = vmul.f32 %v1312_v41, %v685_v53  ;;  %v669_v31 = vsel %vm529_vm5, %v634_v1, %v1322_v50  ;;  %v775_v41 = vmul.f32 %v762_v28, %v1362_v13  ;;  %v749_v33 = vmul.f32 %v742_v27, %v1351_v8 }
  0xd0   : > { %v750_v57 = vadd.f32 %v1357_v11, %v720_v56  ;;  %1038 = vpow2.f32 %v676_v62  ;;  %v678_v47 = vmul.f32 1.442695, %v669_v31  ;;  %v772_v11 = vpop.permute.xlu2 %771  ;;  %vm550_vm15 = vcmp.gt.f32.partialorder %v1369_v17, 0.0 }
  0xd1   : > { %v751_v3 = vadd.f32 %v745_v60, %v721_v59  ;;  %v1035_v6 = vpop.eup %1034  ;;  %v778_v18 = vmul.f32 %v772_v11, %v1360_v12  ;;  %v779_v54 = vmul.f32 %v772_v11, %v1362_v13  ;;  %v747_v17 = vmul.f32 %v737_v52, %v1351_v8 }
  0xd2   : > { %v780_v0 = vadd.f32 %v774_v2, %v750_v57  ;;  %v688_v10 = vsel %vm551_vm14, %v1035_v6, %v670_v29  ;;  %1040 = vpow2.f32 %v678_v47  ;;  %v777_v9 = vmul.f32 %v767_v22, %v1362_v13 }
  0xd3   : > { %v1037_v7 = vpop.eup %1036  ;;  %v781_v14 = vadd.f32 %v775_v41, %v751_v3  ;;  %v724_v15 = vmul.f32 %v1391_v43, %v688_v10 }
  0xd4   : > { %v689_v50 = vsel %vm551_vm14, %v1037_v7, %v671_v35  ;;  %786 = vst [vmem:[%s1483_s30] sm:$0xff] %v780_v0 }
  0xd5   : > { %v725_v63 = vmul.f32 %v1391_v43, %v689_v50  ;;  %787 = vst [vmem:[%s1483_s30 + $0x8] sm:$0xff] %v781_v14  ;;  %v754_v16 = vadd.f32 %v748_v30, %v724_v15  ;;  %v746_v43 = vmul.f32 %v737_v52, %v1337_v61  ;;  %v776_v61 = vmul.f32 %v767_v22, %v1360_v12 }
  0xd6   : > { %v1039_v19 = vpop.eup %1038 }
  0xd7   : > { %v755_v20 = vadd.f32 %v749_v33, %v725_v63  ;;  %v686_v36 = vsel %vm550_vm15, %v1039_v19, %v668_v58  ;;  %v784_v21 = vadd.f32 %v778_v18, %v754_v16 }
  0xd8   : > { %v1041_v23 = vpop.eup %1040  ;;  %v722_v5 = vmul.f32 %v1421_v4, %v686_v36 }
  0xd9   : > { %v785_v24 = vadd.f32 %v779_v54, %v755_v20  ;;  %v687_v26 = vsel %vm550_vm15, %v1041_v23, %v669_v31  ;;  %790 = vst [vmem:[%s1483_s30 + $0x20] sm:$0xff] %v784_v21 }
  0xda   : > { %v723_v27 = vmul.f32 %v1421_v4, %v687_v26  ;;  %v752_v29 = vadd.f32 %v746_v43, %v722_v5 }
  0xdb   : > { %791 = vst [vmem:[%s1483_s30 + $0x28] sm:$0xff] %v785_v24 }
  0xdc   : > { %v753_v32 = vadd.f32 %v747_v17, %v723_v27  ;;  %v782_v34 = vadd.f32 %v776_v61, %v752_v29 }
  0xde   : > { %v783_v35 = vadd.f32 %v777_v9, %v753_v32  ;;  %788 = vst [vmem:[%s1483_s30 + $0x10] sm:$0xff] %v782_v34 }
  0xe0   : > { %789 = vst [vmem:[%s1483_s30 + $0x18] sm:$0xff] %v783_v35 }
  0xe1   : > { %1069 = shalt.err (!%p1066_p5)
}
  0xe2   : > { %s1123_s28 = smov 256   ;;  %s1124_s30 = smov 16  }
  0xe3   : > { %945 = dma.vmem_to_hbm [thread:$0]  (%p1220_p4), %s808_s21, 768, %s810_s20, %s793_s22, %s1123_s28, %s1123_s28, %s1124_s30  }
  0xe4 PF: > { %p951_p6 = scmp.ge.s32.totalorder %s1120_s18, 2  ;;  %s824_s19 = sand.u32 1, %s1100_s13  }
  0xe5   : > { %s825_s27 = scalar_lea.sflag [#allocation3], %s824_s19 }
  0xe6   : > { %p948_p7 = pnand %p951_p6, %p1227_p8 }
  0xe8   : > { %p949_p9 = pneg %p948_p7 }
  0xea   : > { %1095 = dma.done.wait (%p949_p9), %s825_s27, 768  }
  0xeb   : > { %1097 = vsyncadd (%p949_p9), %s825_s27, 4294966528  ;;  %s23_s18 = sadd.s32 1, %s1120_s18   ;;  %s1568_s16 = sld [smem:[#allocation5_spill]] }
  0xec   : > { %p20_p10 = scmp.ge.s32.totalorder %s23_s18, 4   ;;  %s1569_s17 = sld [smem:[#allocation6_spill]] }
  0xed   : > { %s1570_s13 = smov %s1104_s14  ;;  %s1571_s14 = smov %s1108_s15 }
  0xee   : > { %s1572_s15 = smov %s1233_s26  ;;  %22 = sbr.rel (!%p20_p10) target bundleno = 4 (0x4), region = 101 }
  0xf3   :  { %831 = vsyncpa [#allocation3], 1 }
  0xf4   :  { %833 = vsyncpa [#allocation3 + $0x1], 1 }

</bundles_post_ra>
